<compile_context>
chip_gen: v5e
topology: v5e:2x2
jax: 0.10.0
libtpu: 0.0.40
codegen_flags: <defaults>
</compile_context>

<pallas_src>
import jax
import jax.numpy as jnp
from jax.experimental import pallas as pl
from jax.experimental.pallas import tpu as pltpu

KERNEL = 5
STRIDE = 2
PAD = 2
BN_EPS = 1e-5
LEAKY_SLOPE = 0.2

_LANE = 128


def _round_up(x, m):
    return (x + m - 1) // m * m


def _vmem_limit_bytes():
    """~3/4 of physical VMEM: ~96 MiB on v5e/v6e (128 MiB), ~48 MiB on v7x (64 MiB)."""
    cap = 64 * 1024 * 1024
    try:
        cap = int(pltpu.get_tpu_info().vmem_capacity_bytes)
    except Exception:
        pass
    return min(cap * 3 // 4, 100 * 1024 * 1024)


def _pick_tile(total, align, cap, footprint_fn, budget):
    """Largest divisor of `total` that is a multiple of `align` (or == total),
    is <= cap, and whose estimated VMEM footprint fits `budget`."""
    cands = [d for d in range(min(total, cap), 0, -1)
             if total % d == 0 and (d % align == 0 or d == total)]
    if not cands:
        cands = [total]
    for d in cands:
        if footprint_fn(d) <= budget:
            return d
    return cands[-1]


# ---------- Pass 1: conv matmul (resident weights) + per-channel sum / sumsq ------
def _conv_stats_kernel(p_ref, w_ref, y_ref, stats_ref):
    # p_ref:     (thw, kdim_p)   bf16 im2col patch tile
    # w_ref:     (kdim_p, cout_p) bf16 weights, VMEM-resident (constant index_map)
    # y_ref:     (thw, cout_p)   bf16 raw conv output tile
    # stats_ref: (8, cout_p)     f32 per-tile [sum, sumsq, 0, 0, 0, 0, 0, 0]
    y = jnp.dot(p_ref[...], w_ref[...], preferred_element_type=jnp.float32)
    y_ref[...] = y.astype(y_ref.dtype)
    s = jnp.sum(y, axis=0, keepdims=True)           # (1, cout_p)
    ss = jnp.sum(y * y, axis=0, keepdims=True)      # (1, cout_p)
    stats_ref[...] = jnp.concatenate(
        [s, ss, jnp.zeros((6,) + s.shape[1:], jnp.float32)], axis=0)


# ---------- Pass 2: BN affine + LeakyReLU + in-kernel transpose to channel-major --
def _bn_act_transpose_kernel(y_ref, scale_ref, shift_ref, o_ref):
    # y_ref: (thw2, cout_p) bf16; scale/shift: (1, cout_p) f32; o_ref: (cout_p, thw2)
    y = y_ref[...].astype(jnp.float32)
    y = y * scale_ref[...] + shift_ref[...]
    y = jnp.where(y > 0, y, LEAKY_SLOPE * y)
    o_ref[...] = y.T.astype(o_ref.dtype)            # XLU transpose; lane-dense store


@jax.jit
def unet_down_forward(x_nchw, weight_oihw, gamma, beta):
    """x_nchw: (N, Cin, H, W); weight_oihw: (Cout, Cin, K, K); gamma/beta: (Cout,)."""
    n, cin, h, w = x_nchw.shape
    cout = weight_oihw.shape[0]
    out_dtype = x_nchw.dtype

    ho = (h + 2 * PAD - KERNEL) // STRIDE + 1
    wo = (w + 2 * PAD - KERNEL) // STRIDE + 1
    hw = ho * wo
    kdim = KERNEL * KERNEL * cin

    # Lane-dense padded extents (Cout padded to 256 when > 128 -> fills 256-wide MXU).
    cout_p = _round_up(cout, _LANE if cout <= _LANE else 2 * _LANE)
    kdim_p = _round_up(kdim, _LANE)
    hw_p = _round_up(hw, _LANE)

    # --- glue: bf16 NHWC + im2col (single fusable pad; no extra full-array copies) -
    x_nhwc = jnp.transpose(x_nchw, (0, 2, 3, 1)).astype(jnp.bfloat16)
    xp = jnp.pad(x_nhwc, ((0, 0), (PAD, PAD), (PAD, PAD), (0, 0)))
    taps = []
    for kh in range(KERNEL):
        for kw in range(KERNEL):
            taps.append(xp[:, kh:kh + STRIDE * ho:STRIDE,
                           kw:kw + STRIDE * wo:STRIDE, :])
    patches = jnp.stack(taps, axis=3).reshape(n, hw, kdim)
    patches = jnp.pad(patches, ((0, 0), (0, hw_p - hw), (0, kdim_p - kdim)))

    # weight (O,I,kh,kw) -> (kh,kw,I,O) -> (kdim, Cout); matches patch column order.
    w_mat = jnp.transpose(weight_oihw, (2, 3, 1, 0)).reshape(kdim, cout)
    w_p = jnp.pad(w_mat.astype(jnp.bfloat16),
                  ((0, kdim_p - kdim), (0, cout_p - cout)))
    gamma_p = jnp.pad(gamma.astype(jnp.float32), (0, cout_p - cout))
    beta_p = jnp.pad(beta.astype(jnp.float32), (0, cout_p - cout))

    # --- tiling / VMEM budget (generation-aware) ----------------------------------
    vmem_limit = _vmem_limit_bytes()
    budget = vmem_limit // 2            # headroom for Mosaic internal scratch

    def fp1(t):  # dbl-buffered patch + y tiles, resident weights, stats
        return (2 * t * kdim_p * 2 + 2 * kdim_p * cout_p * 2
                + 2 * t * cout_p * 2 + 2 * 8 * cout_p * 4)

    def fp2(t):  # dbl-buffered bf16 y in + f32 out + scale/shift
        return 2 * t * cout_p * 2 + 2 * t * cout_p * 4 + 4 * cout_p * 4

    cap1, cap2 = 1024, 2048
    if n == 1 and hw_p >= 2 * _LANE:    # keep >=2 parallel steps for v7x megacore
        cap1 = min(cap1, hw_p // 2)
        cap2 = min(cap2, hw_p // 2)
    thw1 = _pick_tile(hw_p, 8, cap1, fp1, budget)
    thw2 = _pick_tile(hw_p, _LANE, cap2, fp2, budget)
    g1 = hw_p // thw1
    g2 = hw_p // thw2

    # --- pass 1: conv matmul + partial BN statistics -------------------------------
    y_bf16, stats = pl.pallas_call(
        _conv_stats_kernel,
        out_shape=(jax.ShapeDtypeStruct((n, hw_p, cout_p), jnp.bfloat16),
                   jax.ShapeDtypeStruct((n * g1, 8, cout_p), jnp.float32)),
        grid_spec=pltpu.PrefetchScalarGridSpec(
            num_scalar_prefetch=0,
            grid=(n, g1),
            in_specs=[
                pl.BlockSpec((None, thw1, kdim_p), lambda b, j: (b, j, 0)),
                # Resident weights: constant block index => DMA'd once, stays in VMEM.
                pl.BlockSpec((kdim_p, cout_p), lambda b, j: (0, 0)),
            ],
            out_specs=[
                pl.BlockSpec((None, thw1, cout_p), lambda b, j: (b, j, 0)),
                pl.BlockSpec((None, 8, cout_p), lambda b, j: (b * g1 + j, 0, 0)),
            ],
        ),
        compiler_params=pltpu.CompilerParams(
            dimension_semantics=("parallel", "parallel"),
            vmem_limit_bytes=vmem_limit),
    )(patches, w_p)

    # --- glue: finalize BN stats (biased variance, training-mode BatchNorm) --------
    # Zero-padded rows/channels contribute 0 to both sums, so dividing by the true
    # count m keeps the statistics exact.  (E[y^2]-E[y]^2 in f32 is a documented
    # approximation; normalization is applied to the bf16-rounded y.)
    m = n * hw
    sums = jnp.sum(stats, axis=0)                   # (8, cout_p)
    mean = sums[0] / m
    var = jnp.maximum(sums[1] / m - mean * mean, 0.0)
    scale = gamma_p * jax.lax.rsqrt(var + BN_EPS)   # (cout_p,)
    shift = beta_p - mean * scale                   # (cout_p,)

    # --- pass 2: normalization + LeakyReLU, channel-major output -------------------
    out_cm = pl.pallas_call(
        _bn_act_transpose_kernel,
        out_shape=jax.ShapeDtypeStruct((n, cout_p, hw_p), out_dtype),
        grid_spec=pltpu.PrefetchScalarGridSpec(
            num_scalar_prefetch=0,
            grid=(n, g2),
            in_specs=[
                pl.BlockSpec((None, thw2, cout_p), lambda b, j: (b, j, 0)),
                pl.BlockSpec((1, cout_p), lambda b, j: (0, 0)),
                pl.BlockSpec((1, cout_p), lambda b, j: (0, 0)),
            ],
            out_specs=pl.BlockSpec((None, cout_p, thw2), lambda b, j: (b, 0, j)),
        ),
        compiler_params=pltpu.CompilerParams(
            dimension_semantics=("parallel", "parallel"),
            vmem_limit_bytes=vmem_limit),
    )(y_bf16, scale.reshape(1, cout_p), shift.reshape(1, cout_p))

    # Channel-major kernel output => NCHW is just a slice + reshape (no transpose).
    return out_cm[:, :cout, :hw].reshape(n, cout, ho, wo)


def _reference(x_nchw, weight_oihw, gamma, beta):
    """Pure-JAX reference of the PyTorch forward (training-mode BatchNorm)."""
    y = jax.lax.conv_general_dilated(
        x_nchw, weight_oihw,
        window_strides=(STRIDE, STRIDE),
        padding=((PAD, PAD), (PAD, PAD)),
        dimension_numbers=("NCHW", "OIHW", "NCHW"))
    mean = jnp.mean(y, axis=(0, 2, 3), keepdims=True)
    var = jnp.var(y, axis=(0, 2, 3), keepdims=True)  # biased, matches BN train mode
    y = (y - mean) / jnp.sqrt(var + BN_EPS)
    y = y * gamma.reshape(1, -1, 1, 1) + beta.reshape(1, -1, 1, 1)
    return jnp.where(y > 0, y, LEAKY_SLOPE * y)


if __name__ == "__main__":
    # Small shapes: batch=2, input_size=4, output_size=8, spatial=16.
    N, CIN, COUT, H, W = 2, 4, 8, 16, 16

    key = jax.random.PRNGKey(0)
    kx, kw, kg, kb = jax.random.split(key, 4)
    x = jax.random.normal(kx, (N, CIN, H, W), dtype=jnp.float32)
    weight = 0.1 * jax.random.normal(kw, (COUT, CIN, KERNEL, KERNEL),
                                     dtype=jnp.float32)
    gamma = 1.0 + 0.1 * jax.random.normal(kg, (COUT,), dtype=jnp.float32)
    beta = 0.1 * jax.random.normal(kb, (COUT,), dtype=jnp.float32)

    out = jax.block_until_ready(unet_down_forward(x, weight, gamma, beta))
    ref = jax.block_until_ready(_reference(x, weight, gamma, beta))

    assert out.shape == (N, COUT, H // STRIDE, W // STRIDE), out.shape
    # bf16 MXU path: BN-normalized outputs are O(1), so 5e-2 covers bf16 rounding.
    err = float(jnp.max(jnp.abs(out - ref)))
    assert err < 5e-2, err

    print("KERNEL_OK")
</pallas_src>

<mosaic_0001>
module attributes {stable_mosaic.version = 11 : i64} {
  func.func @_conv_stats_kernel(%arg0: i32, %arg1: i32, %arg2: memref<1x128x128xbf16, #tpu.memory_space<vmem>>, %arg3: memref<128x128xbf16, #tpu.memory_space<vmem>>, %arg4: memref<1x128x128xbf16, #tpu.memory_space<vmem>>, %arg5: memref<1x8x128xf32, #tpu.memory_space<vmem>>) attributes {dimension_semantics = [#tpu.dimension_semantics<parallel>, #tpu.dimension_semantics<parallel>], iteration_bounds = array<i64: 2, 1>, scalar_prefetch = 0 : i64, scratch_operands = 0 : i64, tpu.core_type = #tpu.core_type<tc>, window_params = [{transform_indices = @transform_0, window_bounds = array<i64: 1, 128, 128>}, {pipeline_mode = #tpu.pipeline_mode<synchronous>, transform_indices = @transform_1, window_bounds = array<i64: 128, 128>}, {transform_indices = @transform_2, window_bounds = array<i64: 1, 128, 128>}, {transform_indices = @transform_3, window_bounds = array<i64: 1, 8, 128>}]} {
    %c0 = arith.constant 0 : index
    %c0_0 = arith.constant 0 : index
    %c0_1 = arith.constant 0 : index
    %0 = vector.load %arg2[%c0, %c0_0, %c0_1] : memref<1x128x128xbf16, #tpu.memory_space<vmem>>, vector<1x128x128xbf16>
    %1 = vector.shape_cast %0 : vector<1x128x128xbf16> to vector<128x128xbf16>
    %c0_2 = arith.constant 0 : index
    %c0_3 = arith.constant 0 : index
    %2 = vector.load %arg3[%c0_2, %c0_3] : memref<128x128xbf16, #tpu.memory_space<vmem>>, vector<128x128xbf16>
    %cst = arith.constant dense<0.000000e+00> : vector<128x128xf32>
    %3 = tpu.matmul %1, %2, %cst {dimension_numbers = #tpu.dot_dimension_numbers<[1], [0], [0], [1], [0, 0, 1, 1], [], []>} : vector<128x128xbf16>, vector<128x128xbf16>, vector<128x128xf32> -> vector<128x128xf32>
    %4 = arith.truncf %3 : vector<128x128xf32> to vector<128x128xbf16>
    %c0_4 = arith.constant 0 : index
    %c0_5 = arith.constant 0 : index
    %c0_6 = arith.constant 0 : index
    %5 = vector.load %arg4[%c0_4, %c0_5, %c0_6] : memref<1x128x128xbf16, #tpu.memory_space<vmem>>, vector<1x128x128xbf16>
    %6 = vector.shape_cast %5 : vector<1x128x128xbf16> to vector<128x128xbf16>
    %7 = vector.shape_cast %4 : vector<128x128xbf16> to vector<1x128x128xbf16>
    tpu.vector_store %arg4[%c0_4, %c0_5, %c0_6], %7 {strides = array<i32>} : memref<1x128x128xbf16, #tpu.memory_space<vmem>>, vector<1x128x128xbf16>,
    %cst_7 = arith.constant dense<0.000000e+00> : vector<128xf32>
    %8 = vector.multi_reduction <add>, %3, %cst_7 [0] : vector<128x128xf32> to vector<128xf32>
    %9 = vector.shape_cast %8 : vector<128xf32> to vector<1x128xf32>
    %10 = arith.mulf %3, %3 : vector<128x128xf32>
    %cst_8 = arith.constant dense<0.000000e+00> : vector<128xf32>
    %11 = vector.multi_reduction <add>, %10, %cst_8 [0] : vector<128x128xf32> to vector<128xf32>
    %12 = vector.shape_cast %11 : vector<128xf32> to vector<1x128xf32>
    %cst_9 = arith.constant 0.000000e+00 : f32
    %13 = vector.broadcast %cst_9 : f32 to vector<6x128xf32>
    %14 = tpu.concatenate %9, %12, %13 in 0 : vector<1x128xf32>, vector<1x128xf32>, vector<6x128xf32> -> vector<8x128xf32>
    %c0_10 = arith.constant 0 : index
    %c0_11 = arith.constant 0 : index
    %c0_12 = arith.constant 0 : index
    %15 = vector.load %arg5[%c0_10, %c0_11, %c0_12] : memref<1x8x128xf32, #tpu.memory_space<vmem>>, vector<1x8x128xf32>
    %16 = vector.shape_cast %15 : vector<1x8x128xf32> to vector<8x128xf32>
    %17 = vector.shape_cast %14 : vector<8x128xf32> to vector<1x8x128xf32>
    tpu.vector_store %arg5[%c0_10, %c0_11, %c0_12], %17 {strides = array<i32>} : memref<1x8x128xf32, #tpu.memory_space<vmem>>, vector<1x8x128xf32>,
    return
  }
  func.func @transform_0(%arg0: i32, %arg1: i32) -> (i32, i32, i32) {
    %c0_i32 = arith.constant 0 : i32
    %c0_i32_0 = arith.constant 0 : i32
    return %arg0, %arg1, %c0_i32 : i32, i32, i32
  }
  func.func @transform_1(%arg0: i32, %arg1: i32) -> (i32, i32) {
    %c0_i32 = arith.constant 0 : i32
    %c0_i32_0 = arith.constant 0 : i32
    %c0_i32_1 = arith.constant 0 : i32
    return %c0_i32, %c0_i32_0 : i32, i32
  }
  func.func @transform_2(%arg0: i32, %arg1: i32) -> (i32, i32, i32) {
    %c0_i32 = arith.constant 0 : i32
    %c0_i32_0 = arith.constant 0 : i32
    return %arg0, %arg1, %c0_i32 : i32, i32, i32
  }
  func.func @transform_3(%arg0: i32, %arg1: i32) -> (i32, i32, i32) {
    %c1_i32 = arith.constant 1 : i32
    %0 = arith.muli %arg0, %c1_i32 : i32
    %1 = arith.addi %0, %arg1 : i32
    %c0_i32 = arith.constant 0 : i32
    %c0_i32_0 = arith.constant 0 : i32
    %c0_i32_1 = arith.constant 0 : i32
    return %1, %c0_i32, %c0_i32_0 : i32, i32, i32
  }
}

module attributes {stable_mosaic.version = 11 : i64} {
  func.func @_bn_act_transpose_kernel(%arg0: i32, %arg1: i32, %arg2: memref<1x128x128xbf16, #tpu.memory_space<vmem>>, %arg3: memref<1x128xf32, #tpu.memory_space<vmem>>, %arg4: memref<1x128xf32, #tpu.memory_space<vmem>>, %arg5: memref<1x128x128xf32, #tpu.memory_space<vmem>>) attributes {dimension_semantics = [#tpu.dimension_semantics<parallel>, #tpu.dimension_semantics<parallel>], iteration_bounds = array<i64: 2, 1>, scalar_prefetch = 0 : i64, scratch_operands = 0 : i64, tpu.core_type = #tpu.core_type<tc>, window_params = [{transform_indices = @transform_0, window_bounds = array<i64: 1, 128, 128>}, {pipeline_mode = #tpu.pipeline_mode<synchronous>, transform_indices = @transform_1, window_bounds = array<i64: 1, 128>}, {pipeline_mode = #tpu.pipeline_mode<synchronous>, transform_indices = @transform_2, window_bounds = array<i64: 1, 128>}, {transform_indices = @transform_3, window_bounds = array<i64: 1, 128, 128>}]} {
    %c0 = arith.constant 0 : index
    %c0_0 = arith.constant 0 : index
    %c0_1 = arith.constant 0 : index
    %0 = vector.load %arg2[%c0, %c0_0, %c0_1] : memref<1x128x128xbf16, #tpu.memory_space<vmem>>, vector<1x128x128xbf16>
    %1 = vector.shape_cast %0 : vector<1x128x128xbf16> to vector<128x128xbf16>
    %2 = arith.extf %1 : vector<128x128xbf16> to vector<128x128xf32>
    %c0_2 = arith.constant 0 : index
    %c0_3 = arith.constant 0 : index
    %3 = vector.load %arg3[%c0_2, %c0_3] : memref<1x128xf32, #tpu.memory_space<vmem>>, vector<1x128xf32>
    %4 = vector.broadcast %3 : vector<1x128xf32> to vector<128x128xf32>
    %5 = arith.mulf %2, %4 : vector<128x128xf32>
    %c0_4 = arith.constant 0 : index
    %c0_5 = arith.constant 0 : index
    %6 = vector.load %arg4[%c0_4, %c0_5] : memref<1x128xf32, #tpu.memory_space<vmem>>, vector<1x128xf32>
    %7 = vector.broadcast %6 : vector<1x128xf32> to vector<128x128xf32>
    %8 = arith.addf %5, %7 : vector<128x128xf32>
    %cst = arith.constant 0.000000e+00 : f32
    %9 = vector.broadcast %cst : f32 to vector<128x128xf32>
    %10 = arith.cmpf ogt, %8, %9 : vector<128x128xf32>
    %cst_6 = arith.constant 2.000000e-01 : f32
    %11 = vector.broadcast %cst_6 : f32 to vector<128x128xf32>
    %12 = arith.mulf %11, %8 : vector<128x128xf32>
    %13 = arith.select %10, %8, %12 : vector<128x128xi1>, vector<128x128xf32>
    %14 = tpu.transpose %13, [1, 0] : vector<128x128xf32> -> vector<128x128xf32>
    %c0_7 = arith.constant 0 : index
    %c0_8 = arith.constant 0 : index
    %c0_9 = arith.constant 0 : index
    %15 = vector.load %arg5[%c0_7, %c0_8, %c0_9] : memref<1x128x128xf32, #tpu.memory_space<vmem>>, vector<1x128x128xf32>
    %16 = vector.shape_cast %15 : vector<1x128x128xf32> to vector<128x128xf32>
    %17 = vector.shape_cast %14 : vector<128x128xf32> to vector<1x128x128xf32>
    tpu.vector_store %arg5[%c0_7, %c0_8, %c0_9], %17 {strides = array<i32>} : memref<1x128x128xf32, #tpu.memory_space<vmem>>, vector<1x128x128xf32>,
    return
  }
  func.func @transform_0(%arg0: i32, %arg1: i32) -> (i32, i32, i32) {
    %c0_i32 = arith.constant 0 : i32
    %c0_i32_0 = arith.constant 0 : i32
    return %arg0, %arg1, %c0_i32 : i32, i32, i32
  }
  func.func @transform_1(%arg0: i32, %arg1: i32) -> (i32, i32) {
    %c0_i32 = arith.constant 0 : i32
    %c0_i32_0 = arith.constant 0 : i32
    %c0_i32_1 = arith.constant 0 : i32
    return %c0_i32, %c0_i32_0 : i32, i32
  }
  func.func @transform_2(%arg0: i32, %arg1: i32) -> (i32, i32) {
    %c0_i32 = arith.constant 0 : i32
    %c0_i32_0 = arith.constant 0 : i32
    %c0_i32_1 = arith.constant 0 : i32
    return %c0_i32, %c0_i32_0 : i32, i32
  }
  func.func @transform_3(%arg0: i32, %arg1: i32) -> (i32, i32, i32) {
    %c0_i32 = arith.constant 0 : i32
    %c0_i32_0 = arith.constant 0 : i32
    return %arg0, %c0_i32, %arg1 : i32, i32, i32
  }
}

</mosaic_0001>

<bundles_post_ra>
// kernel: unet_down_forward.2
= control target key start
LH: loop header
LB: loop body
LE: loop exit
PB: predicated region body
PF: predicated region fallthrough
CT: control target
= control target key end

     0   :  { %s852_s12 = smov 0   ;;  %s854_s13 = smov 0   ;;  %s940_s0 = inlined_call_operand.vmem [shape: bf16[2,128,128], index: 0, kind: input, shape index: {}]   ;;  %s941_s1 = inlined_call_operand.vmem [shape: bf16[128,128], index: 1, kind: input, shape index: {}]   ;;  %s942_s2 = inlined_call_operand.vmem [shape: bf16[2,128,128], index: 2, kind: output, shape index: {0}]   ;;  %s943_s3 = inlined_call_operand.vmem [shape: f32[2,8,128], index: 3, kind: output, shape index: {1}]  }
   0x1   :  { %s856_s14 = smov 0  }
   0x2 LB: > { %s26_s15 = sadd.s32 1, %s826_s13  ;;  %p623_p0 = scmp.ge.s32.totalorder %s830_s14, 1  ;;  %s830_s14 = sphi %s856_s14, %s14_s14   ;;  %s826_s13 = sphi %s854_s13, %s945_s13   ;;  %s822_s12 = sphi %s852_s12, %s944_s12  }
   0x3   : > { %p28_p1 = scmp.ge.s32.totalorder %s26_s15, 2  ;;  %p163_p2 = scmp.lt.s32.totalorder %s830_s14, 3 }
   0x5   : > { %s947_s15 = smov (%p28_p1, %s26_s15), 0  ;;  %p164_p3 = pnand %p623_p0, %p163_p2 }
   0x6   : > { %p201_p4 = scmp.lt.s32.totalorder (!%p164_p3), %s822_s12, 1 }
   0x7   : > { %167 = sbr.rel (%p164_p3) target bundleno = 237 (0xed), region = 28 }
   0xc   : > { %v712_v0 = vld [vmem:[%s941_s1 + $0x38] sm:$0xff]  ;;  %v711_v1 = vld [vmem:[%s941_s1 + $0x30] sm:$0xff]  ;;  %v710_v2 = vld [vmem:[%s941_s1 + $0x28] sm:$0xff]  ;;  %s949_s12 = smov (!%p201_p4, %s822_s12), 1  ;;  %vm493_vm0 = vcmask 1040384   ;;  %vm495_vm1 = vcmask 1041408  }
   0xd   : > { %354 = vmatpush.bf16.msra.mxu0 %v712_v0  ;;  %760 = vmatpush.bf16.msra.mxu1 %v712_v0  ;;  %v709_v3 = vld [vmem:[%s941_s1 + $0x20] sm:$0xff]  ;;  %v708_v4 = vld [vmem:[%s941_s1 + $0x18] sm:$0xff]  ;;  %v707_v5 = vld [vmem:[%s941_s1 + $0x10] sm:$0xff]  ;;  %s695_s30 = sshll.u32 %s949_s12, 6  ;;  %s628_s16 = sshll.u32 %s949_s12, 3 }
   0xe   : > { %761 = vmatpush.bf16.msra.mxu2 %v712_v0  ;;  %762 = vmatpush.bf16.msra.mxu3 %v712_v0  ;;  %v706_v6 = vld [vmem:[%s941_s1 + $0x8] sm:$0xff]  ;;  %v705_v7 = vld [vmem:[%s941_s1] sm:$0xff]  ;;  %s208_s8 = scalar_lea.vmem %s940_s0, %s695_s30  ;;  %s913_s11 = scalar_lea.vmem %s942_s2, %s695_s30 }
   0xf   : > { %v697_v8 = vld [vmem:[%s208_s8] sm:$0xff]  ;;  %v699_v9 = vld [vmem:[%s208_s8 + $0x10] sm:$0xff]  ;;  %v698_v12 = vld [vmem:[%s208_s8 + $0x8] sm:$0xff]  ;;  %s224_s19 = scalar_lea.vmem %s943_s3, %s628_s16 }
  0x10   : > { %v701_v10 = vld [vmem:[%s208_s8 + $0x20] sm:$0xff]  ;;  %v703_v11 = vld [vmem:[%s208_s8 + $0x30] sm:$0xff]  ;;  %v700_v13 = vld [vmem:[%s208_s8 + $0x18] sm:$0xff] }
  0x11   : > { %355 = vmatpush.bf16.msra.mxu0 %v711_v1  ;;  %763 = vmatpush.bf16.msra.mxu1 %v711_v1  ;;  %v702_v14 = vld [vmem:[%s208_s8 + $0x28] sm:$0xff]  ;;  %v704_v15 = vld [vmem:[%s208_s8 + $0x38] sm:$0xff] }
  0x12   : > { %764 = vmatpush.bf16.msra.mxu2 %v711_v1  ;;  %765 = vmatpush.bf16.msra.mxu3 %v711_v1 }
  0x15   : > { %356 = vmatpush.bf16.msra.mxu0 %v710_v2  ;;  %766 = vmatpush.bf16.msra.mxu1 %v710_v2 }
  0x16   : > { %767 = vmatpush.bf16.msra.mxu2 %v710_v2  ;;  %768 = vmatpush.bf16.msra.mxu3 %v710_v2 }
  0x19   : > { %357 = vmatpush.bf16.msra.mxu0 %v709_v3  ;;  %769 = vmatpush.bf16.msra.mxu1 %v709_v3 }
  0x1a   : > { %770 = vmatpush.bf16.msra.mxu2 %v709_v3  ;;  %771 = vmatpush.bf16.msra.mxu3 %v709_v3 }
  0x1d   : > { %358 = vmatpush.bf16.msra.mxu0 %v708_v4  ;;  %772 = vmatpush.bf16.msra.mxu1 %v708_v4 }
  0x1e   : > { %773 = vmatpush.bf16.msra.mxu2 %v708_v4  ;;  %774 = vmatpush.bf16.msra.mxu3 %v708_v4 }
  0x21   : > { %359 = vmatpush.bf16.msra.mxu0 %v707_v5  ;;  %775 = vmatpush.bf16.msra.mxu1 %v707_v5 }
  0x22   : > { %776 = vmatpush.bf16.msra.mxu2 %v707_v5  ;;  %777 = vmatpush.bf16.msra.mxu3 %v707_v5 }
  0x25   : > { %360 = vmatpush.bf16.msra.mxu0 %v706_v6  ;;  %778 = vmatpush.bf16.msra.mxu1 %v706_v6 }
  0x26   : > { %779 = vmatpush.bf16.msra.mxu2 %v706_v6  ;;  %780 = vmatpush.bf16.msra.mxu3 %v706_v6 }
  0x29   : > { %361 = vmatpush.bf16.msra.mxu0 %v705_v7  ;;  %781 = vmatpush.bf16.msra.mxu1 %v705_v7 }
  0x2a   : > { %782 = vmatpush.bf16.msra.mxu2 %v705_v7  ;;  %783 = vmatpush.bf16.msra.mxu3 %v705_v7 }
  0x2c   : > { %362 = vmatmul.bf16.vlgmr.msra.gmra.mxu0 %v697_v8  ;;  %372 = vmatmul.bf16.vlgmr.msra.gmra.mxu1 %v699_v9 }
  0x2d   : > { %382 = vmatmul.bf16.vlgmr.msra.gmra.mxu2 %v701_v10  ;;  %392 = vmatmul.bf16.vlgmr.msra.gmra.mxu3 %v703_v11 }
  0x3c   : > { %367 = vmatmul.bf16.gmra.mxu0 %v698_v12  ;;  %377 = vmatmul.bf16.gmra.mxu1 %v700_v13 }
  0x3d   : > { %387 = vmatmul.bf16.gmra.mxu2 %v702_v14  ;;  %397 = vmatmul.bf16.gmra.mxu3 %v704_v15 }
  0xa9   : > { %v363_v16 = vpop.f32.mrf.mxu0  ;;  %v373_v17 = vpop.f32.mrf.mxu1 }
  0xaa   : > { %v456_v31 = vmul.f32 %v363_v16, %v363_v16  ;;  %v460_v45 = vmul.f32 %v373_v17, %v373_v17 }
  0xb0   : > { %v383_v18 = vpop.f32.mrf.mxu2  ;;  %v906_v19 = vpop.f32.mrf.mxu3 }
  0xb1   : > { %v365_v20 = vpop.f32.mrf.mxu0  ;;  %v375_v21 = vpop.f32.mrf.mxu1  ;;  %v464_v61 = vmul.f32 %v383_v18, %v383_v18  ;;  %v468_v9 = vmul.f32 %v906_v19, %v906_v19 }
  0xb2   : > { %v716_v22 = vpack.c.bf16 %v365_v20, %v363_v16  ;;  %v726_v23 = vpack.c.bf16 %v375_v21, %v373_v17  ;;  %v457_v30 = vmul.f32 %v365_v20, %v365_v20  ;;  %v435_v33 = vadd.f32 %v365_v20, %v363_v16 }
  0xb3   : > { %v461_v48 = vmul.f32 %v375_v21, %v375_v21 }
  0xb4   : > { %717 = vst [vmem:[%s913_s11] sm:$0xff] %v716_v22   ;;  %v472_v34 = vadd.f32 %v457_v30, %v456_v31 }
  0xb5   : > { %754 = vst [vmem:[%s913_s11 + $0x10] sm:$0xff] %v726_v23  }
  0xb8   : > { %v385_v24 = vpop.f32.mrf.mxu2  ;;  %v395_v25 = vpop.f32.mrf.mxu3 }
  0xb9   : > { %v368_v26 = vpop.f32.mrf.mxu0  ;;  %v378_v27 = vpop.f32.mrf.mxu1  ;;  %v736_v28 = vpack.c.bf16 %v385_v24, %v383_v18  ;;  %v746_v29 = vpack.c.bf16 %v395_v25, %v906_v19  ;;  %v465_v0 = vmul.f32 %v385_v24, %v385_v24  ;;  %v469_v12 = vmul.f32 %v395_v25, %v395_v25 }
  0xba   : > { %v458_v32 = vmul.f32 %v368_v26, %v368_v26  ;;  %v436_v35 = vadd.f32 %v435_v33, %v368_v26  ;;  %v462_v51 = vmul.f32 %v378_v27, %v378_v27 }
  0xbb   : > { %756 = vst [vmem:[%s913_s11 + $0x20] sm:$0xff] %v736_v28  }
  0xbc   : > { %758 = vst [vmem:[%s913_s11 + $0x30] sm:$0xff] %v746_v29   ;;  %v473_v38 = vadd.f32 %v472_v34, %v458_v32 }
  0xc0   : > { %v388_v36 = vpop.f32.mrf.mxu2  ;;  %v398_v37 = vpop.f32.mrf.mxu3 }
  0xc1   : > { %v370_v39 = vpop.f32.mrf.mxu0  ;;  %v380_v40 = vpop.f32.mrf.mxu1  ;;  %v466_v4 = vmul.f32 %v388_v36, %v388_v36  ;;  %v470_v16 = vmul.f32 %v398_v37, %v398_v37 }
  0xc2   : > { %v721_v41 = vpack.c.bf16 %v370_v39, %v368_v26  ;;  %v437_v42 = vadd.f32 %v436_v35, %v370_v39  ;;  %v459_v43 = vmul.f32 %v370_v39, %v370_v39  ;;  %v731_v44 = vpack.c.bf16 %v380_v40, %v378_v27 }
  0xc3   : > { %v463_v59 = vmul.f32 %v380_v40, %v380_v40 }
  0xc4   : > { %753 = vst [vmem:[%s913_s11 + $0x8] sm:$0xff] %v721_v41   ;;  %v438_v46 = vadd.f32 %v437_v42, %v373_v17  ;;  %v474_v47 = vadd.f32 %v473_v38, %v459_v43 }
  0xc5   : > { %755 = vst [vmem:[%s913_s11 + $0x18] sm:$0xff] %v731_v44  }
  0xc6   : > { %v475_v49 = vadd.f32 %v474_v47, %v460_v45  ;;  %v439_v50 = vadd.f32 %v438_v46, %v375_v21 }
  0xc8   : > { %v440_v52 = vadd.f32 %v439_v50, %v378_v27  ;;  %v476_v53 = vadd.f32 %v475_v49, %v461_v48  ;;  %v390_v54 = vpop.f32.mrf.mxu2  ;;  %v400_v55 = vpop.f32.mrf.mxu3 }
  0xc9   : > { %v741_v56 = vpack.c.bf16 %v390_v54, %v388_v36  ;;  %v751_v57 = vpack.c.bf16 %v400_v55, %v398_v37  ;;  %v467_v8 = vmul.f32 %v390_v54, %v390_v54  ;;  %v471_v21 = vmul.f32 %v400_v55, %v400_v55 }
  0xca   : > { %v441_v58 = vadd.f32 %v440_v52, %v380_v40  ;;  %v477_v60 = vadd.f32 %v476_v53, %v462_v51 }
  0xcb   : > { %757 = vst [vmem:[%s913_s11 + $0x28] sm:$0xff] %v741_v56  }
  0xcc   : > { %v442_v62 = vadd.f32 %v441_v58, %v383_v18  ;;  %v478_v63 = vadd.f32 %v477_v60, %v463_v59  ;;  %759 = vst [vmem:[%s913_s11 + $0x38] sm:$0xff] %v751_v57  }
  0xce   : > { %v479_v1 = vadd.f32 %v478_v63, %v464_v61  ;;  %v443_v2 = vadd.f32 %v442_v62, %v385_v24 }
  0xd0   : > { %v444_v3 = vadd.f32 %v443_v2, %v388_v36  ;;  %v480_v5 = vadd.f32 %v479_v1, %v465_v0 }
  0xd2   : > { %v481_v6 = vadd.f32 %v480_v5, %v466_v4  ;;  %v445_v7 = vadd.f32 %v444_v3, %v390_v54 }
  0xd4   : > { %v446_v10 = vadd.f32 %v445_v7, %v906_v19  ;;  %v482_v11 = vadd.f32 %v481_v6, %v467_v8 }
  0xd6   : > { %v483_v13 = vadd.f32 %v482_v11, %v468_v9  ;;  %v447_v14 = vadd.f32 %v446_v10, %v395_v25 }
  0xd8   : > { %v448_v15 = vadd.f32 %v447_v14, %v398_v37  ;;  %v484_v17 = vadd.f32 %v483_v13, %v469_v12 }
  0xda   : > { %v485_v18 = vadd.f32 %v484_v17, %v470_v16  ;;  %v449_v20 = vadd.f32 %v448_v15, %v400_v55 }
  0xdc   : > { %v450_v22 = vrot.slane %v449_v20, 4  ;;  %v486_v23 = vadd.f32 %v485_v18, %v471_v21 }
  0xde   : > { %v451_v24 = vadd.f32 %v450_v22, %v449_v20  ;;  %v487_v26 = vrot.slane %v486_v23, 4 }
  0xe0   : > { %v452_v27 = vrot.slane %v451_v24, 2  ;;  %v488_v28 = vadd.f32 %v487_v26, %v486_v23 }
  0xe2   : > { %v453_v29 = vadd.f32 %v452_v27, %v451_v24  ;;  %v489_v30 = vrot.slane %v488_v28, 2 }
  0xe4   : > { %v454_v19 = vrot.slane %v453_v29, 1  ;;  %v490_v31 = vadd.f32 %v489_v30, %v488_v28 }
  0xe6   : > { %v491_v32 = vrot.slane %v490_v31, 1  ;;  %v455_v25 = vadd.f32 %v454_v19, %v453_v29 }
  0xe8   : > { %v492_v33 = vadd.f32 %v491_v32, %v490_v31 }
  0xea   : > { %v494_v34 = vsel %vm493_vm0, %v455_v25, %v492_v33 }
  0xeb   : > { %v496_v35 = vsel %vm495_vm1, %v494_v34, 0.0 }
  0xec   : > { %497 = vst [vmem:[%s224_s19] sm:$0xff] %v496_v35 }
  0xed PF: > { %s14_s14 = sadd.s32 1, %s830_s14   ;;  %s944_s12 = smov %s826_s13 }
  0xee   : > { %p11_p5 = scmp.ge.s32.totalorder %s14_s14, 4   ;;  %s945_s13 = smov %s947_s15 }
  0xf0   :  { %13 = sbr.rel (!%p11_p5) target bundleno = 2 (0x2), region = 70 }

// kernel: unet_down_forward.3
= control target key start
LH: loop header
LB: loop body
LE: loop exit
PB: predicated region body
PF: predicated region fallthrough
CT: control target
= control target key end

     0   :  { %s580_s12 = smov 0   ;;  %s582_s13 = smov 0   ;;  %s687_s0 = inlined_call_operand.vmem [shape: bf16[2,128,128], index: 0, kind: input, shape index: {}]   ;;  %s688_s1 = inlined_call_operand.vmem [shape: f32[1,128], index: 1, kind: input, shape index: {}]   ;;  %s689_s2 = inlined_call_operand.vmem [shape: f32[1,128], index: 2, kind: input, shape index: {}]   ;;  %s690_s3 = inlined_call_operand.vmem [shape: f32[2,128,128], index: 3, kind: output, shape index: {}]  }
   0x1   :  { %s584_s14 = smov 0  }
   0x2 LB: > { %s25_s15 = sadd.s32 1, %s554_s13  ;;  %p462_p0 = scmp.ge.s32.totalorder %s558_s14, 1  ;;  %s558_s14 = sphi %s584_s14, %s13_s14   ;;  %s554_s13 = sphi %s582_s13, %s692_s13   ;;  %s550_s12 = sphi %s580_s12, %s691_s12  }
   0x3   : > { %p27_p1 = scmp.ge.s32.totalorder %s25_s15, 2  ;;  %p158_p2 = scmp.lt.s32.totalorder %s558_s14, 3 }
   0x5   : > { %s694_s15 = smov (%p27_p1, %s25_s15), 0  ;;  %p159_p3 = pnand %p462_p0, %p158_p2 }
   0x6   : > { %p190_p4 = scmp.lt.s32.totalorder (!%p159_p3), %s550_s12, 1 }
   0x7   : > { %162 = sbr.rel (%p159_p3) target bundleno = 311 (0x137), region = 32 }
   0xc   : > { %s696_s12 = smov (!%p190_p4, %s550_s12), 1  ;;  %v609_v0 = vld [vmem:[%s688_s1] ss:$0 sm:$0xff] }
   0xd   : > { %s469_s16 = sshll.u32 %s696_s12, 6  ;;  %v615_v3 = vld [vmem:[%s689_s2] ss:$0 sm:$0xff]  ;;  %s470_s24 = sshll.u32 %s696_s12, 7 }
   0xe   : > { %s604_s19 = scalar_lea.vmem %s687_s0, %s469_s16  ;;  %s660_s27 = scalar_lea.vmem %s690_s3, %s470_s24 }
   0xf   : > { %v472_v1 = vld [vmem:[%s604_s19] sm:$0xff]   ;;  %v503_v7 = vld [vmem:[%s604_s19 + $0x8] sm:$0xff]   ;;  %v504_v20 = vld [vmem:[%s604_s19 + $0x10] sm:$0xff]  }
  0x10   : > { %v473_v2 = vunpack.c.l.bf16 %v472_v1  ;;  %v474_v4 = vunpack.c.h.bf16 %v472_v1  ;;  %v477_v11 = vunpack.c.l.bf16 %v503_v7  ;;  %v478_v17 = vunpack.c.h.bf16 %v503_v7  ;;  %v505_v31 = vld [vmem:[%s604_s19 + $0x18] sm:$0xff]   ;;  %v506_v42 = vld [vmem:[%s604_s19 + $0x20] sm:$0xff]   ;;  %v507_v53 = vld [vmem:[%s604_s19 + $0x28] sm:$0xff]  }
  0x11   : > { %v481_v23 = vunpack.c.l.bf16 %v504_v20  ;;  %v482_v28 = vunpack.c.h.bf16 %v504_v20  ;;  %v485_v34 = vunpack.c.l.bf16 %v505_v31  ;;  %v486_v39 = vunpack.c.h.bf16 %v505_v31  ;;  %v508_v1 = vld [vmem:[%s604_s19 + $0x30] sm:$0xff]  }
  0x12   : > { %v243_v5 = vmul.f32 %v609_v0, %v473_v2  ;;  %v244_v6 = vmul.f32 %v609_v0, %v474_v4  ;;  %v245_v14 = vmul.f32 %v609_v0, %v477_v11  ;;  %v246_v19 = vmul.f32 %v609_v0, %v478_v17 }
  0x13   : > { %v247_v25 = vmul.f32 %v609_v0, %v481_v23  ;;  %v248_v30 = vmul.f32 %v609_v0, %v482_v28  ;;  %v249_v36 = vmul.f32 %v609_v0, %v485_v34  ;;  %v250_v41 = vmul.f32 %v609_v0, %v486_v39 }
  0x14   : > { %v263_v8 = vadd.f32 %v615_v3, %v243_v5  ;;  %v264_v10 = vadd.f32 %v615_v3, %v244_v6  ;;  %v265_v16 = vadd.f32 %v615_v3, %v245_v14  ;;  %v266_v22 = vadd.f32 %v615_v3, %v246_v19 }
  0x15   : > { %v267_v27 = vadd.f32 %v615_v3, %v247_v25  ;;  %v268_v33 = vadd.f32 %v615_v3, %v248_v30  ;;  %v269_v38 = vadd.f32 %v615_v3, %v249_v36  ;;  %v270_v44 = vadd.f32 %v615_v3, %v250_v41 }
  0x16   : > { %vm279_vm0 = vcmp.gt.f32.partialorder %v263_v8, 0.0  ;;  %v295_v9 = vmul.f32 0.2, %v263_v8  ;;  %v296_v13 = vmul.f32 0.2, %v264_v10  ;;  %vm280_vm1 = vcmp.gt.f32.partialorder %v264_v10, 0.0 }
  0x17   : > { %v297_v18 = vmul.f32 0.2, %v265_v16  ;;  %vm281_vm2 = vcmp.gt.f32.partialorder %v265_v16, 0.0  ;;  %v298_v24 = vmul.f32 0.2, %v266_v22  ;;  %vm282_vm3 = vcmp.gt.f32.partialorder %v266_v22, 0.0 }
  0x18   : > { %v311_v12 = vsel %vm279_vm0, %v263_v8, %v295_v9  ;;  %v312_v15 = vsel %vm280_vm1, %v264_v10, %v296_v13  ;;  %v299_v29 = vmul.f32 0.2, %v267_v27  ;;  %vm283_vm4 = vcmp.gt.f32.partialorder %v267_v27, 0.0  ;;  %v509_v13 = vld [vmem:[%s604_s19 + $0x38] sm:$0xff]  }
  0x19   : > { %327 = vxpose.xlu0.b32.start [1/16] %v311_v12, 128  ;;  %v313_v21 = vsel %vm281_vm2, %v265_v16, %v297_v18  ;;  %v314_v26 = vsel %vm282_vm3, %v266_v22, %v298_v24  ;;  %v300_v35 = vmul.f32 0.2, %v268_v33  ;;  %vm284_vm5 = vcmp.gt.f32.partialorder %v268_v33, 0.0 }
  0x1a   : > { %v315_v32 = vsel %vm283_vm4, %v267_v27, %v299_v29  ;;  %v301_v40 = vmul.f32 0.2, %v269_v38  ;;  %vm285_vm6 = vcmp.gt.f32.partialorder %v269_v38, 0.0  ;;  %v489_v45 = vunpack.c.l.bf16 %v506_v42 }
  0x1b   : > { %v316_v37 = vsel %vm284_vm5, %v268_v33, %v300_v35  ;;  %v302_v46 = vmul.f32 0.2, %v270_v44  ;;  %vm286_vm7 = vcmp.gt.f32.partialorder %v270_v44, 0.0  ;;  %v490_v50 = vunpack.c.h.bf16 %v506_v42 }
  0x1c   : > { %v317_v43 = vsel %vm285_vm6, %v269_v38, %v301_v40  ;;  %v251_v47 = vmul.f32 %v609_v0, %v489_v45  ;;  %v493_v56 = vunpack.c.l.bf16 %v507_v53  ;;  %v494_v61 = vunpack.c.h.bf16 %v507_v53 }
  0x1d   : > { %v318_v48 = vsel %vm286_vm7, %v270_v44, %v302_v46  ;;  %v252_v52 = vmul.f32 %v609_v0, %v490_v50  ;;  %v497_v5 = vunpack.c.l.bf16 %v508_v1  ;;  %v498_v10 = vunpack.c.h.bf16 %v508_v1 }
  0x1e   : > { %v271_v49 = vadd.f32 %v615_v3, %v251_v47  ;;  %v253_v58 = vmul.f32 %v609_v0, %v493_v56  ;;  %v254_v63 = vmul.f32 %v609_v0, %v494_v61  ;;  %v501_v16 = vunpack.c.l.bf16 %v509_v13 }
  0x1f   : > { %v272_v55 = vadd.f32 %v615_v3, %v252_v52  ;;  %v255_v7 = vmul.f32 %v609_v0, %v497_v5  ;;  %v256_v12 = vmul.f32 %v609_v0, %v498_v10 }
  0x20   : > { %v303_v51 = vmul.f32 0.2, %v271_v49  ;;  %vm287_vm8 = vcmp.gt.f32.partialorder %v271_v49, 0.0  ;;  %v273_v60 = vadd.f32 %v615_v3, %v253_v58  ;;  %v274_v4 = vadd.f32 %v615_v3, %v254_v63 }
  0x21   : > { %328 = vxpose.xlu0.b32.cont [2/16] %v312_v15, 128  ;;  %v304_v57 = vmul.f32 0.2, %v272_v55  ;;  %vm288_vm9 = vcmp.gt.f32.partialorder %v272_v55, 0.0  ;;  %v275_v9 = vadd.f32 %v615_v3, %v255_v7  ;;  %v276_v15 = vadd.f32 %v615_v3, %v256_v12 }
  0x22   : > { %v319_v54 = vsel %vm287_vm8, %v271_v49, %v303_v51  ;;  %v305_v62 = vmul.f32 0.2, %v273_v60  ;;  %vm289_vm10 = vcmp.gt.f32.partialorder %v273_v60, 0.0  ;;  %v306_v6 = vmul.f32 0.2, %v274_v4 }
  0x23   : > { %v320_v59 = vsel %vm288_vm9, %v272_v55, %v304_v57  ;;  %vm290_vm11 = vcmp.gt.f32.partialorder %v274_v4, 0.0  ;;  %v307_v11 = vmul.f32 0.2, %v275_v9  ;;  %vm291_vm12 = vcmp.gt.f32.partialorder %v275_v9, 0.0 }
  0x24   : > { %v321_v2 = vsel %vm289_vm10, %v273_v60, %v305_v62  ;;  %v322_v8 = vsel %vm290_vm11, %v274_v4, %v306_v6  ;;  %v308_v17 = vmul.f32 0.2, %v276_v15  ;;  %v257_v18 = vmul.f32 %v609_v0, %v501_v16 }
  0x25   : > { %v323_v14 = vsel %vm291_vm12, %v275_v9, %v307_v11  ;;  %vm292_vm13 = vcmp.gt.f32.partialorder %v276_v15, 0.0 }
  0x26   : > { %v324_v19 = vsel %vm292_vm13, %v276_v15, %v308_v17  ;;  %v277_v20 = vadd.f32 %v615_v3, %v257_v18 }
  0x28   : > { %v309_v22 = vmul.f32 0.2, %v277_v20  ;;  %vm293_vm14 = vcmp.gt.f32.partialorder %v277_v20, 0.0 }
  0x29   : > { %329 = vxpose.xlu0.b32.cont [3/16] %v313_v21, 128  ;;  %v502_v21 = vunpack.c.h.bf16 %v509_v13 }
  0x2a   : > { %v325_v24 = vsel %vm293_vm14, %v277_v20, %v309_v22 }
  0x2b   : > { %v258_v23 = vmul.f32 %v609_v0, %v502_v21 }
  0x2d   : > { %v278_v25 = vadd.f32 %v615_v3, %v258_v23 }
  0x2f   : > { %vm294_vm15 = vcmp.gt.f32.partialorder %v278_v25, 0.0 }
  0x31   : > { %330 = vxpose.xlu0.b32.cont [4/16] %v314_v26, 128  ;;  %v310_v26 = vmul.f32 0.2, %v278_v25 }
  0x33   : > { %v326_v27 = vsel %vm294_vm15, %v278_v25, %v310_v26 }
  0x39   : > { %331 = vxpose.xlu0.b32.cont [5/16] %v315_v32, 128 }
  0x41   : > { %332 = vxpose.xlu0.b32.cont [6/16] %v316_v37, 128 }
  0x49   : > { %333 = vxpose.xlu0.b32.cont [7/16] %v317_v43, 128 }
  0x51   : > { %334 = vxpose.xlu0.b32.cont [8/16] %v318_v48, 128 }
  0x59   : > { %335 = vxpose.xlu0.b32.cont [9/16] %v319_v54, 128 }
  0x61   : > { %336 = vxpose.xlu0.b32.cont [10/16] %v320_v59, 128 }
  0x69   : > { %337 = vxpose.xlu0.b32.cont [11/16] %v321_v2, 128 }
  0x71   : > { %338 = vxpose.xlu0.b32.cont [12/16] %v322_v8, 128 }
  0x79   : > { %339 = vxpose.xlu0.b32.cont [13/16] %v323_v14, 128 }
  0x81   : > { %340 = vxpose.xlu0.b32.cont [14/16] %v324_v19, 128 }
  0x89   : > { %341 = vxpose.xlu0.b32.cont [15/16] %v325_v24, 128 }
  0x91   : > { %342 = vxpose.xlu0.b32.end [16/16] %v326_v27, 128 }
  0xbd   : > { %v343_v0 = vpop.trf.xlu0 }
  0xbe   : > { %359 = vst [vmem:[%s660_s27] sm:$0xff] %v343_v0 }
  0xc5   : > { %v344_v3 = vpop.trf.xlu0 }
  0xc6   : > { %360 = vst [vmem:[%s660_s27 + $0x8] sm:$0xff] %v344_v3 }
  0xcd   : > { %v345_v28 = vpop.trf.xlu0 }
  0xce   : > { %361 = vst [vmem:[%s660_s27 + $0x10] sm:$0xff] %v345_v28 }
  0xd5   : > { %v346_v29 = vpop.trf.xlu0 }
  0xd6   : > { %362 = vst [vmem:[%s660_s27 + $0x18] sm:$0xff] %v346_v29 }
  0xdd   : > { %v347_v30 = vpop.trf.xlu0 }
  0xde   : > { %363 = vst [vmem:[%s660_s27 + $0x20] sm:$0xff] %v347_v30 }
  0xe5   : > { %v348_v31 = vpop.trf.xlu0 }
  0xe6   : > { %364 = vst [vmem:[%s660_s27 + $0x28] sm:$0xff] %v348_v31 }
  0xed   : > { %v349_v32 = vpop.trf.xlu0 }
  0xee   : > { %365 = vst [vmem:[%s660_s27 + $0x30] sm:$0xff] %v349_v32 }
  0xf5   : > { %v350_v33 = vpop.trf.xlu0 }
  0xf6   : > { %366 = vst [vmem:[%s660_s27 + $0x38] sm:$0xff] %v350_v33 }
  0xfd   : > { %v351_v34 = vpop.trf.xlu0 }
  0xfe   : > { %367 = vst [vmem:[%s660_s27 + $0x40] sm:$0xff] %v351_v34 }
 0x105   : > { %v352_v35 = vpop.trf.xlu0 }
 0x106   : > { %368 = vst [vmem:[%s660_s27 + $0x48] sm:$0xff] %v352_v35 }
 0x10d   : > { %v353_v36 = vpop.trf.xlu0 }
 0x10e   : > { %369 = vst [vmem:[%s660_s27 + $0x50] sm:$0xff] %v353_v36 }
 0x115   : > { %v354_v37 = vpop.trf.xlu0 }
 0x116   : > { %370 = vst [vmem:[%s660_s27 + $0x58] sm:$0xff] %v354_v37 }
 0x11d   : > { %v355_v38 = vpop.trf.xlu0 }
 0x11e   : > { %371 = vst [vmem:[%s660_s27 + $0x60] sm:$0xff] %v355_v38 }
 0x125   : > { %v356_v39 = vpop.trf.xlu0 }
 0x126   : > { %372 = vst [vmem:[%s660_s27 + $0x68] sm:$0xff] %v356_v39 }
 0x12d   : > { %v357_v40 = vpop.trf.xlu0 }
 0x12e   : > { %373 = vst [vmem:[%s660_s27 + $0x70] sm:$0xff] %v357_v40 }
 0x135   : > { %v358_v41 = vpop.trf.xlu0 }
 0x136   : > { %374 = vst [vmem:[%s660_s27 + $0x78] sm:$0xff] %v358_v41 }
 0x137 PF: > { %s13_s14 = sadd.s32 1, %s558_s14   ;;  %s691_s12 = smov %s554_s13 }
 0x138   : > { %p10_p5 = scmp.ge.s32.totalorder %s13_s14, 4   ;;  %s692_s13 = smov %s694_s15 }
 0x13a   :  { %12 = sbr.rel (!%p10_p5) target bundleno = 2 (0x2), region = 62 }

</bundles_post_ra>
